<compile_context>
chip_gen: v7x
topology: tpu7x:2x2x1
jax: 0.10.0
libtpu: 0.0.40
codegen_flags: <defaults>
</compile_context>

<pallas_src>
import jax
import jax.numpy as jnp
from jax.experimental import pallas as pl
from jax.experimental.pallas import tpu as pltpu

HIDDEN_DIM = 64
NUM_SHARDS = 10
INPUT_DIM = NUM_SHARDS
OUTPUT_DIM = NUM_SHARDS


def _round_up(n, m):
    return ((n + m - 1) // m) * m


def mlp_softmax_kernel(x_ref, w1_ref, b1_ref, w2_ref, b2_ref, w3_ref, b3_ref,
                       o_ref):
    x = x_ref[...]

    # layer1 + relu
    h1 = jnp.dot(x, w1_ref[...], preferred_element_type=jnp.float32)
    h1 = jnp.maximum(h1 + b1_ref[...], 0.0)

    # layer2 + relu
    h2 = jnp.dot(h1, w2_ref[...], preferred_element_type=jnp.float32)
    h2 = jnp.maximum(h2 + b2_ref[...], 0.0)

    # layer3 + softmax over the 10-wide feature axis (torch dim=1).
    logits = jnp.dot(h2, w3_ref[...], preferred_element_type=jnp.float32)
    logits = logits + b3_ref[...]

    m = jnp.max(logits, axis=-1, keepdims=True)
    e = jnp.exp(logits - m)
    denom = jnp.sum(e, axis=-1, keepdims=True)
    # exact reciprocal kept: output must satisfy the 1e-5 sum-to-1 tolerance
    o_ref[...] = (e * pl.reciprocal(denom, approx=False)).astype(o_ref.dtype)


def mlp_forward(x, params, *, tb=2048):
    """x: (batch, INPUT_DIM) f32 -> (batch, OUTPUT_DIM) f32 softmax probs."""
    w1, b1, w2, b2, w3, b3 = params
    batch = x.shape[0]

    x = x.astype(jnp.float32)
    w1 = w1.astype(jnp.float32)
    w2 = w2.astype(jnp.float32)
    w3 = w3.astype(jnp.float32)
    # Biases as (1, dim) rows for simple VMEM broadcast layout.
    b1 = b1.reshape(1, -1).astype(jnp.float32)
    b2 = b2.reshape(1, -1).astype(jnp.float32)
    b3 = b3.reshape(1, -1).astype(jnp.float32)

    # Batch tile: if the whole batch fits in one tile, use the exact batch size
    # (block == full array is always layout-legal).  Otherwise use a multiple
    # of 8 sublanes and let Pallas mask the ragged last block.
    if batch <= tb:
        tb = batch
    else:
        tb = _round_up(min(tb, batch), 8)
    grid = (pl.cdiv(batch, tb),)

    # Weights/biases: constant index_map -> stay resident in VMEM across the
    # whole grid (no per-step re-DMA).
    resident = lambda a: pl.BlockSpec(a.shape, lambda i: (0,) * a.ndim)

    out = pl.pallas_call(
        mlp_softmax_kernel,
        out_shape=jax.ShapeDtypeStruct((batch, OUTPUT_DIM), jnp.float32),
        grid=grid,
        in_specs=[
            pl.BlockSpec((tb, INPUT_DIM), lambda i: (i, 0)),   # x: batch-tiled
            resident(w1), resident(b1),
            resident(w2), resident(b2),
            resident(w3), resident(b3),
        ],
        out_specs=pl.BlockSpec((tb, OUTPUT_DIM), lambda i: (i, 0)),
        compiler_params=pltpu.CompilerParams(
            dimension_semantics=("parallel",)),   # megacore split on v7x
    )(x, w1, b1, w2, b2, w3, b3)

    return out


def init_params(key):
    """Deterministic init mimicking nn.Linear's uniform(-1/sqrt(fan_in), ...)."""
    ks = jax.random.split(key, 6)

    def linear(kw, kb, fan_in, fan_out):
        bound = 1.0 / jnp.sqrt(fan_in)
        w = jax.random.uniform(kw, (fan_in, fan_out), jnp.float32, -bound, bound)
        b = jax.random.uniform(kb, (fan_out,), jnp.float32, -bound, bound)
        return w, b

    w1, b1 = linear(ks[0], ks[1], INPUT_DIM, HIDDEN_DIM)
    w2, b2 = linear(ks[2], ks[3], HIDDEN_DIM, HIDDEN_DIM)
    w3, b3 = linear(ks[4], ks[5], HIDDEN_DIM, OUTPUT_DIM)
    return (w1, b1, w2, b2, w3, b3)


def reference_forward(x, params):
    w1, b1, w2, b2, w3, b3 = params
    h1 = jnp.maximum(x @ w1 + b1, 0.0)
    h2 = jnp.maximum(h1 @ w2 + b2, 0.0)
    return jax.nn.softmax(h2 @ w3 + b3, axis=1)


if __name__ == "__main__":
    key = jax.random.PRNGKey(0)
    k_params, k_x = jax.random.split(key)

    params = init_params(k_params)

    # Small primary check (single full-batch tile).
    batch = 8
    x = jax.random.normal(k_x, (batch, INPUT_DIM), jnp.float32)
    out = jax.block_until_ready(mlp_forward(x, params))
    ref = reference_forward(x, params)
    assert out.shape == (batch, OUTPUT_DIM)
    assert jnp.allclose(out, ref, atol=1e-5, rtol=1e-5)
    assert jnp.allclose(jnp.sum(out, axis=1), 1.0, atol=1e-5)

    # Multi-block grid with a ragged last block (37 = 2*16 + 5 rows).
    batch2 = 37
    x2 = jax.random.normal(jax.random.PRNGKey(1), (batch2, INPUT_DIM),
                           jnp.float32)
    out2 = jax.block_until_ready(mlp_forward(x2, params, tb=16))
    ref2 = reference_forward(x2, params)
    assert out2.shape == (batch2, OUTPUT_DIM)
    assert jnp.allclose(out2, ref2, atol=1e-5, rtol=1e-5)
    assert jnp.allclose(jnp.sum(out2, axis=1), 1.0, atol=1e-5)

    # Tiny batch (< 8 sublanes): block equals full array, still legal.
    batch3 = 2
    x3 = jax.random.normal(jax.random.PRNGKey(2), (batch3, INPUT_DIM),
                           jnp.float32)
    out3 = jax.block_until_ready(mlp_forward(x3, params))
    ref3 = reference_forward(x3, params)
    assert out3.shape == (batch3, OUTPUT_DIM)
    assert jnp.allclose(out3, ref3, atol=1e-5, rtol=1e-5)

    print("KERNEL_OK")
</pallas_src>

<mosaic_0001>
module attributes {stable_mosaic.version = 11 : i64} {
  func.func @mlp_softmax_kernel(%arg0: i32, %arg1: memref<8x10xf32, #tpu.memory_space<vmem>>, %arg2: memref<10x64xf32, #tpu.memory_space<vmem>>, %arg3: memref<1x64xf32, #tpu.memory_space<vmem>>, %arg4: memref<64x64xf32, #tpu.memory_space<vmem>>, %arg5: memref<1x64xf32, #tpu.memory_space<vmem>>, %arg6: memref<64x10xf32, #tpu.memory_space<vmem>>, %arg7: memref<1x10xf32, #tpu.memory_space<vmem>>, %arg8: memref<8x10xf32, #tpu.memory_space<vmem>>) attributes {dimension_semantics = [#tpu.dimension_semantics<parallel>], iteration_bounds = array<i64: 1>, scalar_prefetch = 0 : i64, scratch_operands = 0 : i64, tpu.core_type = #tpu.core_type<tc>, window_params = [{transform_indices = @transform_0, window_bounds = array<i64: 8, 10>}, {pipeline_mode = #tpu.pipeline_mode<synchronous>, transform_indices = @transform_1, window_bounds = array<i64: 10, 64>}, {pipeline_mode = #tpu.pipeline_mode<synchronous>, transform_indices = @transform_2, window_bounds = array<i64: 1, 64>}, {pipeline_mode = #tpu.pipeline_mode<synchronous>, transform_indices = @transform_3, window_bounds = array<i64: 64, 64>}, {pipeline_mode = #tpu.pipeline_mode<synchronous>, transform_indices = @transform_4, window_bounds = array<i64: 1, 64>}, {pipeline_mode = #tpu.pipeline_mode<synchronous>, transform_indices = @transform_5, window_bounds = array<i64: 64, 10>}, {pipeline_mode = #tpu.pipeline_mode<synchronous>, transform_indices = @transform_6, window_bounds = array<i64: 1, 10>}, {transform_indices = @transform_7, window_bounds = array<i64: 8, 10>}]} {
    %c0 = arith.constant 0 : index
    %c0_0 = arith.constant 0 : index
    %0 = vector.load %arg1[%c0, %c0_0] : memref<8x10xf32, #tpu.memory_space<vmem>>, vector<8x10xf32>
    %c0_1 = arith.constant 0 : index
    %c0_2 = arith.constant 0 : index
    %1 = vector.load %arg2[%c0_1, %c0_2] : memref<10x64xf32, #tpu.memory_space<vmem>>, vector<10x64xf32>
    %cst = arith.constant dense<0.000000e+00> : vector<8x64xf32>
    %2 = tpu.matmul %0, %1, %cst {dimension_numbers = #tpu.dot_dimension_numbers<[1], [0], [0], [1], [0, 0, 1, 1], [], []>} : vector<8x10xf32>, vector<10x64xf32>, vector<8x64xf32> -> vector<8x64xf32>
    %c0_3 = arith.constant 0 : index
    %c0_4 = arith.constant 0 : index
    %3 = vector.load %arg3[%c0_3, %c0_4] : memref<1x64xf32, #tpu.memory_space<vmem>>, vector<1x64xf32>
    %4 = vector.broadcast %3 : vector<1x64xf32> to vector<8x64xf32>
    %5 = arith.addf %2, %4 : vector<8x64xf32>
    %cst_5 = arith.constant 0.000000e+00 : f32
    %6 = vector.broadcast %cst_5 : f32 to vector<8x64xf32>
    %7 = arith.maximumf %5, %6 : vector<8x64xf32>
    %c0_6 = arith.constant 0 : index
    %c0_7 = arith.constant 0 : index
    %8 = vector.load %arg4[%c0_6, %c0_7] : memref<64x64xf32, #tpu.memory_space<vmem>>, vector<64x64xf32>
    %cst_8 = arith.constant dense<0.000000e+00> : vector<8x64xf32>
    %9 = tpu.matmul %7, %8, %cst_8 {dimension_numbers = #tpu.dot_dimension_numbers<[1], [0], [0], [1], [0, 0, 1, 1], [], []>} : vector<8x64xf32>, vector<64x64xf32>, vector<8x64xf32> -> vector<8x64xf32>
    %c0_9 = arith.constant 0 : index
    %c0_10 = arith.constant 0 : index
    %10 = vector.load %arg5[%c0_9, %c0_10] : memref<1x64xf32, #tpu.memory_space<vmem>>, vector<1x64xf32>
    %11 = vector.broadcast %10 : vector<1x64xf32> to vector<8x64xf32>
    %12 = arith.addf %9, %11 : vector<8x64xf32>
    %cst_11 = arith.constant 0.000000e+00 : f32
    %13 = vector.broadcast %cst_11 : f32 to vector<8x64xf32>
    %14 = arith.maximumf %12, %13 : vector<8x64xf32>
    %c0_12 = arith.constant 0 : index
    %c0_13 = arith.constant 0 : index
    %15 = vector.load %arg6[%c0_12, %c0_13] : memref<64x10xf32, #tpu.memory_space<vmem>>, vector<64x10xf32>
    %cst_14 = arith.constant dense<0.000000e+00> : vector<8x10xf32>
    %16 = tpu.matmul %14, %15, %cst_14 {dimension_numbers = #tpu.dot_dimension_numbers<[1], [0], [0], [1], [0, 0, 1, 1], [], []>} : vector<8x64xf32>, vector<64x10xf32>, vector<8x10xf32> -> vector<8x10xf32>
    %c0_15 = arith.constant 0 : index
    %c0_16 = arith.constant 0 : index
    %17 = vector.load %arg7[%c0_15, %c0_16] : memref<1x10xf32, #tpu.memory_space<vmem>>, vector<1x10xf32>
    %18 = vector.broadcast %17 : vector<1x10xf32> to vector<8x10xf32>
    %19 = arith.addf %16, %18 : vector<8x10xf32>
    %cst_17 = arith.constant dense<0xFF800000> : vector<8xf32>
    %20 = vector.multi_reduction <maximumf>, %19, %cst_17 [1] : vector<8x10xf32> to vector<8xf32>
    %21 = vector.shape_cast %20 : vector<8xf32> to vector<8x1xf32>
    %22 = vector.broadcast %21 : vector<8x1xf32> to vector<8x10xf32>
    %23 = arith.subf %19, %22 : vector<8x10xf32>
    %24 = math.exp %23 : vector<8x10xf32>
    %cst_18 = arith.constant dense<0.000000e+00> : vector<8xf32>
    %25 = vector.multi_reduction <add>, %24, %cst_18 [1] : vector<8x10xf32> to vector<8xf32>
    %26 = vector.shape_cast %25 : vector<8xf32> to vector<8x1xf32>
    %27 = tpu.reciprocal %26 : vector<8x1xf32> -> vector<8x1xf32>
    %28 = vector.broadcast %27 : vector<8x1xf32> to vector<8x10xf32>
    %29 = arith.mulf %24, %28 : vector<8x10xf32>
    %c0_19 = arith.constant 0 : index
    %c0_20 = arith.constant 0 : index
    %30 = vector.load %arg8[%c0_19, %c0_20] : memref<8x10xf32, #tpu.memory_space<vmem>>, vector<8x10xf32>
    tpu.vector_store %arg8[%c0_19, %c0_20], %29 {strides = array<i32>} : memref<8x10xf32, #tpu.memory_space<vmem>>, vector<8x10xf32>,
    return
  }
  func.func @transform_0(%arg0: i32) -> (i32, i32) {
    %c0_i32 = arith.constant 0 : i32
    %c0_i32_0 = arith.constant 0 : i32
    return %arg0, %c0_i32 : i32, i32
  }
  func.func @transform_1(%arg0: i32) -> (i32, i32) {
    %c0_i32 = arith.constant 0 : i32
    %c0_i32_0 = arith.constant 0 : i32
    %c0_i32_1 = arith.constant 0 : i32
    return %c0_i32, %c0_i32_0 : i32, i32
  }
  func.func @transform_2(%arg0: i32) -> (i32, i32) {
    %c0_i32 = arith.constant 0 : i32
    %c0_i32_0 = arith.constant 0 : i32
    %c0_i32_1 = arith.constant 0 : i32
    return %c0_i32, %c0_i32_0 : i32, i32
  }
  func.func @transform_3(%arg0: i32) -> (i32, i32) {
    %c0_i32 = arith.constant 0 : i32
    %c0_i32_0 = arith.constant 0 : i32
    %c0_i32_1 = arith.constant 0 : i32
    return %c0_i32, %c0_i32_0 : i32, i32
  }
  func.func @transform_4(%arg0: i32) -> (i32, i32) {
    %c0_i32 = arith.constant 0 : i32
    %c0_i32_0 = arith.constant 0 : i32
    %c0_i32_1 = arith.constant 0 : i32
    return %c0_i32, %c0_i32_0 : i32, i32
  }
  func.func @transform_5(%arg0: i32) -> (i32, i32) {
    %c0_i32 = arith.constant 0 : i32
    %c0_i32_0 = arith.constant 0 : i32
    %c0_i32_1 = arith.constant 0 : i32
    return %c0_i32, %c0_i32_0 : i32, i32
  }
  func.func @transform_6(%arg0: i32) -> (i32, i32) {
    %c0_i32 = arith.constant 0 : i32
    %c0_i32_0 = arith.constant 0 : i32
    %c0_i32_1 = arith.constant 0 : i32
    return %c0_i32, %c0_i32_0 : i32, i32
  }
  func.func @transform_7(%arg0: i32) -> (i32, i32) {
    %c0_i32 = arith.constant 0 : i32
    %c0_i32_0 = arith.constant 0 : i32
    return %arg0, %c0_i32 : i32, i32
  }
}

</mosaic_0001>

<bundles_post_ra>
// kernel: tpu_custom_call.1
= control target key start
LH: loop header
LB: loop body
LE: loop exit
PB: predicated region body
PF: predicated region fallthrough
CT: control target
= control target key end

     0   :  { %12 = vsyncpa [#allocation3], 0  ;;  %s632_s0 = inlined_call_operand.hbm [shape: f32[8,10], index: 0, kind: input, shape index: {}]   ;;  %s633_s1 = inlined_call_operand.vmem [shape: f32[10,64], index: 1, kind: input, shape index: {}]   ;;  %s634_s2 = inlined_call_operand.vmem [shape: f32[1,64], index: 2, kind: input, shape index: {}]   ;;  %s635_s3 = inlined_call_operand.vmem [shape: f32[64,64], index: 3, kind: input, shape index: {}]   ;;  %s636_s4 = inlined_call_operand.vmem [shape: f32[1,64], index: 4, kind: input, shape index: {}]   ;;  %s637_s5 = inlined_call_operand.vmem [shape: f32[64,10], index: 5, kind: input, shape index: {}]   ;;  %s638_s6 = inlined_call_operand.vmem [shape: f32[1,10], index: 6, kind: input, shape index: {}]   ;;  %s639_s7 = inlined_call_operand.hbm [shape: f32[8,10], index: 7, kind: output, shape index: {}]  }
   0x1   :  { %13 = vsyncpa [#allocation4], 0  ;;  %s492_s24 = smov [#allocation2]   ;;  %s444_s28 = scalar_lea.hbm %s632_s0, 128 }
   0x2   :  { %s20_s25 = sshll.u32 %s492_s24, 4  ;;  %p445_p0 = scmp.ne.s32.totalorder %s632_s0, %s444_s28  ;;  %s21_s25 = int_to_ptr.vmem [resolvable:$true] %s20_s25 }
   0x3   :  { %p448_p1 = scmp.lt.u32.totalorder %s444_s28, %s632_s0 }
   0x5   :  { %p450_p2 = pnand %p448_p1, %p445_p0 }
   0x7   :  { %453 = shalt.err (!%p450_p2)
}
   0x8   :  { %s454_s10 = scalar_lea.vmem %s21_s25, 128  ;;  %p459_p4 = scmp.lt.s32.totalorder %s21_s25, %s21_s25 }
   0x9   :  { %p455_p3 = scmp.ne.s32.totalorder %s21_s25, %s454_s10  ;;  %p460_p5 = scmp.lt.s32.totalorder %s454_s10, %s454_s10 }
   0xb   :  { %p461_p6 = por %p460_p5, %p459_p4 }
   0xd   :  { %p462_p7 = pnand %p461_p6, %p455_p3 }
   0xf   :  { %465 = shalt.err (!%p462_p7)
}
  0x10   :  { %23 = dma.hbm_to_vmem [thread:$0]  %s632_s0, 128, %s21_s25, [#allocation3]  }
  0x11   :  { %488 = dma.done.wait [#allocation3], 128  }
  0x12   :  { %489 = vsyncadd [#allocation3], 4294967168  ;;  %v493_v0 = vmov 0.0|0.0   ;;  %vm494_vm0 = vmmov 0   ;;  %v495_v1 = vmov 0.0   ;;  %vm53_vm1 = vcmask 1041408  }
  0x13   :  { %406 = vmatprep.subr.bf16.mxu0 %v493_v0  ;;  %410 = vmatprep.subr.bf16.mxu1 %v493_v0  ;;  %v40_v2 = vld [vmem:[%s633_s1] sm:$0xff]  ;;  %v41_v3 = vld [vmem:[%s633_s1 + $0x8] sm:$0x3]  ;;  %vm496_vm2 = vmmov 1   ;;  %v130_v7 = vld [vmem:[%s635_s3 + $0x10] sm:$0xff]  ;;  %vm49_vm4 = vcmask 80896  }
  0x14   :  { %365 = vmatprep.mubr.msk.f32.mxu0 %vm494_vm0, %v495_v1  ;;  %384 = vmatprep.mubr.msk.f32.mxu1 %vm494_vm0, %v495_v1  ;;  %vm408_vm3 = vmpackc.low %vm53_vm1, %vm496_vm2  ;;  %v407_v4 = vpack.c.bf16 %v41_v3, %v40_v2  ;;  %v128_v5 = vld [vmem:[%s635_s3] sm:$0xff]  ;;  %v129_v6 = vld [vmem:[%s635_s3 + $0x8] sm:$0xff]  ;;  %vm143_vm5 = vcmask 523264  }
  0x15   :  { %v411_v8 = vpack.c.bf16 %v129_v6, %v128_v5  ;;  %v131_v9 = vld [vmem:[%s635_s3 + $0x18] sm:$0xff]  ;;  %v39_v10 = vld [vmem:[#allocation2] sm:$0xff]  ;;  %v133_v13 = vld [vmem:[%s635_s3 + $0x28] sm:$0xff] }
  0x16   :  { %409 = vmatpush3.bf16.msk.msra.mxu0 %vm408_vm3, %v407_v4  ;;  %v414_v11 = vpack.c.bf16 %v131_v9, %v130_v7  ;;  %v132_v12 = vld [vmem:[%s635_s3 + $0x20] sm:$0xff]  ;;  %v134_v15 = vld [vmem:[%s635_s3 + $0x30] sm:$0xff]  ;;  %v135_v16 = vld [vmem:[%s635_s3 + $0x38] sm:$0xff] }
  0x17   :  { %412 = vmatpush3.bf16.msra.mxu1 %v411_v8  ;;  %422 = vmatprep.subr.bf16.mxu0 %v493_v0  ;;  %v417_v14 = vpack.c.bf16 %v133_v13, %v132_v12  ;;  %v420_v17 = vpack.c.bf16 %v135_v16, %v134_v15  ;;  %v218_v18 = vld [vmem:[%s637_s5] sm:$0xff]  ;;  %v219_v19 = vld [vmem:[%s637_s5 + $0x8] sm:$0xff]  ;;  %v220_v20 = vld [vmem:[%s637_s5 + $0x10] sm:$0xff] }
  0x18   :  { %413 = vmatprep.subr.bf16.mxu1 %v493_v0  ;;  %v423_v21 = vpack.c.bf16 %v219_v19, %v218_v18  ;;  %v221_v22 = vld [vmem:[%s637_s5 + $0x18] sm:$0xff]  ;;  %v222_v24 = vld [vmem:[%s637_s5 + $0x20] sm:$0xff]  ;;  %v223_v25 = vld [vmem:[%s637_s5 + $0x28] sm:$0xff] }
  0x19   :  { %366 = vmatmul.mubr.msk.f32.vlgmr.msra.gmra.mrb[0].mxu0 %vm49_vm4, %v39_v10  ;;  %v426_v23 = vpack.c.bf16 %v221_v22, %v220_v20  ;;  %v429_v26 = vpack.c.bf16 %v223_v25, %v222_v24  ;;  %v333_v27 = vld [vmem:[%s634_s2] ss:$0 sm:$0xff]  ;;  %v224_v32 = vld [vmem:[%s637_s5 + $0x30] sm:$0xff]  ;;  %v225_v33 = vld [vmem:[%s637_s5 + $0x38] sm:$0xff] }
  0x1a   :  { %403 = vmatprep.mubr.msk.f32.mxu0 %vm494_vm0, %v495_v1  ;;  %424 = vmatpush3.bf16.msra.mxu0 %v423_v21  ;;  %v432_v34 = vpack.c.bf16 %v225_v33, %v224_v32  ;;  %v336_v35 = vld [vmem:[%s636_s4] ss:$0 sm:$0xff]  ;;  %s497_s4 = smov [#allocation5]  }
  0x1b   :  { %415 = vmatpush3.bf16.msra.mxu1 %v414_v11  ;;  %425 = vmatprep.subr.bf16.mxu0 %v493_v0  ;;  %v338_v40 = vld [vmem:[%s638_s6] ss:$0 sm:$0xff]  ;;  %s324_s5 = sshll.u32 %s497_s4, 4  ;;  %s325_s5 = int_to_ptr.vmem [resolvable:$true] %s324_s5 }
  0x1c   :  { %416 = vmatprep.subr.bf16.mxu1 %v493_v0  ;;  %s466_s6 = scalar_lea.vmem %s325_s5, 128  ;;  %p471_p9 = scmp.lt.s32.totalorder %s325_s5, %s325_s5 }
  0x1d   :  { %p467_p8 = scmp.ne.s32.totalorder %s325_s5, %s466_s6  ;;  %p472_p10 = scmp.lt.s32.totalorder %s466_s6, %s466_s6 }
  0x1e   :  { %427 = vmatpush3.bf16.msra.mxu0 %v426_v23 }
  0x1f   :  { %418 = vmatpush3.bf16.msra.mxu1 %v417_v14  ;;  %428 = vmatprep.subr.bf16.mxu0 %v493_v0  ;;  %p473_p11 = por %p472_p10, %p471_p9 }
  0x20   :  { %419 = vmatprep.subr.bf16.mxu1 %v493_v0 }
  0x21   :  { %p474_p12 = pnand %p473_p11, %p467_p8 }
  0x22   :  { %430 = vmatpush3.bf16.msra.mxu0 %v429_v26 }
  0x23   :  { %421 = vmatpush3.bf16.msra.mxu1 %v420_v17  ;;  %431 = vmatprep.subr.bf16.mxu0 %v493_v0 }
  0x26   :  { %433 = vmatpush3.bf16.msra.mxu0 %v432_v34 }
  0xec   :  { %v123_v28 = vpop.f32.mrb[0].mxu0 }
  0xed   :  { %v124_v29 = vadd.f32 %v333_v27, %v123_v28  ;;  %v367_v30 = vpop.f32.mrb[1].mxu0 }
  0xef   :  { %v127_v31 = vmax.f32 %v124_v29, 0.0 }
  0xf1   :  { %385 = vmatmul.mubr.msk.f32.vlgmr.msra.gmra.mrb[0].mxu1 %vm143_vm5, %v127_v31 }
 0x1c4   :  { %v213_v36 = vpop.f32.mrb[0].mxu1 }
 0x1c5   :  { %v214_v37 = vadd.f32 %v336_v35, %v213_v36  ;;  %v386_v38 = vpop.f32.mrb[1].mxu1 }
 0x1c7   :  { %v217_v39 = vmax.f32 %v214_v37, 0.0 }
 0x1c9   :  { %404 = vmatmul.mubr.msk.f32.vlgmr.msra.gmra.mrb[2].mxu0 %vm143_vm5, %v217_v39 }
 0x29c   :  { %v302_v41 = vpop.f32.mrb[2].mxu0 }
 0x29d   :  { %v303_v42 = vadd.f32 %v338_v40, %v302_v41  ;;  %v405_v43 = vpop.f32.mrb[3].mxu0 }
 0x29f   :  { %v306_v44 = vsel %vm49_vm4, %v303_v42, -inf }
 0x2a0   :  { %307 = vmax.xlane.f32.xlu0 %v306_v44 }
 0x32d   :  { %v308_v45 = vpop.xlane.xlu0 %307 }
 0x32e   :  { %v309_v46 = vsub.f32 %v303_v42, %v308_v45 }
 0x330   :  { %v310_v47 = vmul.f32 1.442695, %v309_v46 }
 0x332   :  { %440 = vpow2.f32 %v310_v47 }
 0x33c   :  { %v441_v48 = vpop.eup %440 }
 0x33d   :  { %v312_v49 = vsel %vm49_vm4, %v441_v48, 0.0 }
 0x33e   :  { %313 = vadd.xlane.f32.xlu0 %v312_v49 }
 0x3cb   :  { %v314_v50 = vpop.xlane.xlu0 %313 }
 0x3cc   :  { %442 = vrcp.f32 %v314_v50 }
 0x3d6   :  { %v443_v51 = vpop.eup %442 }
 0x3d7   :  { %v316_v52 = vmul.f32 %v443_v51, %v441_v48 }
 0x3d9   :  { %317 = vst.msk [vmem:[#allocation5] sm:$0xff] %vm49_vm4, %v316_v52 }
 0x3da   :  { %477 = shalt.err (!%p474_p12)
}
 0x3db   :  { %s478_s28 = scalar_lea.hbm %s639_s7, 128 }
 0x3dc   :  { %p479_p13 = scmp.ne.s32.totalorder %s639_s7, %s478_s28  ;;  %p482_p0 = scmp.lt.u32.totalorder %s478_s28, %s639_s7 }
 0x3de   :  { %p484_p1 = pnand %p482_p0, %p479_p13 }
 0x3e0   :  { %487 = shalt.err (!%p484_p1)
}
 0x3e1   :  { %327 = dma.vmem_to_hbm [thread:$0]  %s325_s5, 128, %s639_s7, [#allocation4]  }
 0x3e2   :  { %490 = dma.done.wait [#allocation4], 128  }
 0x3e3   :  { %491 = vsyncadd [#allocation4], 4294967168 }
 0x3e4   :  { %331 = vsyncpa [#allocation3], 1 }
 0x3e5   :  { %332 = vsyncpa [#allocation4], 1 }

</bundles_post_ra>
